<compile_context>
chip_gen: v6e
topology: v6e:2x2x1
jax: 0.10.0
libtpu: 0.0.40
codegen_flags: <defaults>
</compile_context>

<pallas_src>
import jax
import jax.numpy as jnp
from jax.experimental import pallas as pl
from jax.experimental.pallas import tpu as pltpu


def _l1_kernel(pred_ref, target_ref, out_ref):
    # Pure elementwise VPU work on a lane-dense tile; memory-bound streaming op.
    out_ref[...] = jnp.abs(pred_ref[...] - target_ref[...])


def _round_up(x, m):
    return ((x + m - 1) // m) * m


def l1_loss(pred, target):
    """Elementwise |pred - target|, same shape as the inputs (torch L1Loss.forward)."""
    assert pred.shape == target.shape, "pred and target must have the same shape"

    # torch: if target.numel() == 0: return pred.sum() * 0   (static shape -> Python branch)
    if target.size == 0:
        return jnp.sum(pred) * 0

    dt = jnp.result_type(pred.dtype, target.dtype)
    orig_shape = pred.shape
    n = pred.size

    # ---- wrapper-side re-layout: flatten -> lane-dense (rows, W) slab ----
    W = 512 if n >= 512 else 128               # lane width, multiple of 128
    R = pl.cdiv(n, W)                          # rows needed
    TILE_R = min(512, _round_up(R, 8))         # rows per block, multiple of 8
    R_pad = _round_up(R, TILE_R)               # rows padded to a whole number of blocks

    pred_f = pred.reshape(-1).astype(dt)
    target_f = target.reshape(-1).astype(dt)
    pad = R_pad * W - n
    if pad > 0:
        pred_f = jnp.pad(pred_f, (0, pad))
        target_f = jnp.pad(target_f, (0, pad))
    pred_2d = pred_f.reshape(R_pad, W)
    target_2d = target_f.reshape(R_pad, W)

    grid = (R_pad // TILE_R,)
    block = pl.BlockSpec((TILE_R, W), lambda i: (i, 0))

    out_2d = pl.pallas_call(
        _l1_kernel,
        out_shape=jax.ShapeDtypeStruct((R_pad, W), dt),
        grid=grid,
        in_specs=[block, block],
        out_specs=pl.BlockSpec((TILE_R, W), lambda i: (i, 0)),
        compiler_params=pltpu.CompilerParams(
            dimension_semantics=("parallel",)),   # lets v7x's 2 TCs split the grid
    )(pred_2d, target_2d)

    return out_2d.reshape(-1)[:n].reshape(orig_shape)


def _reference(pred, target):
    return jnp.abs(pred - target)


if __name__ == "__main__":
    key = jax.random.PRNGKey(0)
    k1, k2 = jax.random.split(key)

    # Small shapes consistent with the module: arbitrary same-shape tensors.
    shape = (2, 4, 16, 16)
    pred = jax.random.normal(k1, shape, dtype=jnp.float32)
    target = jax.random.normal(k2, shape, dtype=jnp.float32)

    loss = l1_loss(pred, target)
    jax.block_until_ready(loss)

    ref = _reference(pred, target)
    assert loss.shape == shape
    assert jnp.allclose(loss, ref, atol=1e-6, rtol=1e-6), "mismatch vs reference"

    # Also exercise the empty-target branch (torch: pred.sum() * 0).
    empty = l1_loss(jnp.zeros((0, 3), jnp.float32), jnp.zeros((0, 3), jnp.float32))
    jax.block_until_ready(empty)
    assert empty.shape == () and float(empty) == 0.0

    print("KERNEL_OK")
</pallas_src>

<mosaic_0001>
module attributes {stable_mosaic.version = 11 : i64} {
  func.func @_l1_kernel(%arg0: i32, %arg1: memref<8x512xf32, #tpu.memory_space<vmem>>, %arg2: memref<8x512xf32, #tpu.memory_space<vmem>>, %arg3: memref<8x512xf32, #tpu.memory_space<vmem>>) attributes {dimension_semantics = [#tpu.dimension_semantics<parallel>], iteration_bounds = array<i64: 1>, scalar_prefetch = 0 : i64, scratch_operands = 0 : i64, tpu.core_type = #tpu.core_type<tc>, window_params = [{transform_indices = @transform_0, window_bounds = array<i64: 8, 512>}, {transform_indices = @transform_1, window_bounds = array<i64: 8, 512>}, {transform_indices = @transform_2, window_bounds = array<i64: 8, 512>}]} {
    %c0 = arith.constant 0 : index
    %c0_0 = arith.constant 0 : index
    %0 = vector.load %arg1[%c0, %c0_0] : memref<8x512xf32, #tpu.memory_space<vmem>>, vector<8x512xf32>
    %c0_1 = arith.constant 0 : index
    %c0_2 = arith.constant 0 : index
    %1 = vector.load %arg2[%c0_1, %c0_2] : memref<8x512xf32, #tpu.memory_space<vmem>>, vector<8x512xf32>
    %2 = arith.subf %0, %1 : vector<8x512xf32>
    %3 = math.absf %2 : vector<8x512xf32>
    %c0_3 = arith.constant 0 : index
    %c0_4 = arith.constant 0 : index
    %4 = vector.load %arg3[%c0_3, %c0_4] : memref<8x512xf32, #tpu.memory_space<vmem>>, vector<8x512xf32>
    tpu.vector_store %arg3[%c0_3, %c0_4], %3 {strides = array<i32>} : memref<8x512xf32, #tpu.memory_space<vmem>>, vector<8x512xf32>,
    return
  }
  func.func @transform_0(%arg0: i32) -> (i32, i32) {
    %c0_i32 = arith.constant 0 : i32
    %c0_i32_0 = arith.constant 0 : i32
    return %arg0, %c0_i32 : i32, i32
  }
  func.func @transform_1(%arg0: i32) -> (i32, i32) {
    %c0_i32 = arith.constant 0 : i32
    %c0_i32_0 = arith.constant 0 : i32
    return %arg0, %c0_i32 : i32, i32
  }
  func.func @transform_2(%arg0: i32) -> (i32, i32) {
    %c0_i32 = arith.constant 0 : i32
    %c0_i32_0 = arith.constant 0 : i32
    return %arg0, %c0_i32 : i32, i32
  }
}

</mosaic_0001>

<bundles_post_ra>
// kernel: tpu_custom_call.1
= control target key start
LH: loop header
LB: loop body
LE: loop exit
PB: predicated region body
PF: predicated region fallthrough
CT: control target
= control target key end

     0   :  { %7 = vsyncpa [#allocation3], 0  ;;  %s168_s0 = inlined_call_operand.hbm [shape: f32[8,512], index: 0, kind: input, shape index: {}]   ;;  %s169_s1 = inlined_call_operand.hbm [shape: f32[8,512], index: 1, kind: input, shape index: {}]   ;;  %s170_s2 = inlined_call_operand.hbm [shape: f32[8,512], index: 2, kind: output, shape index: {}]  }
   0x1   :  { %8 = vsyncpa [#allocation6], 0 }
   0x2   :  { %9 = vsyncpa [#allocation4], 0  ;;  %s141_s9 = smov [#allocation2]   ;;  %s142_s11 = smov [#allocation5]  }
   0x3   :  { %s16_s10 = sshll.u32 %s141_s9, 4  ;;  %s26_s12 = sshll.u32 %s142_s11, 4  ;;  %s17_s10 = int_to_ptr.vmem [resolvable:$true] %s16_s10  ;;  %s27_s12 = int_to_ptr.vmem [resolvable:$true] %s26_s12 }
   0x4   :  { %s83_s13 = scalar_lea.vmem %s17_s10, 512  ;;  %p88_p1 = scmp.lt.s32.totalorder %s17_s10, %s17_s10 }
   0x5   :  { %p84_p0 = scmp.ne.s32.totalorder %s17_s10, %s83_s13  ;;  %p89_p2 = scmp.lt.s32.totalorder %s83_s13, %s83_s13 }
   0x7   :  { %p90_p3 = por %p89_p2, %p88_p1 }
   0x9   :  { %p91_p4 = pnand %p90_p3, %p84_p0 }
   0xb   :  { %94 = shalt.err (!%p91_p4)
}
   0xc   :  { %19 = dma.hbm_to_vmem [thread:$0]  %s168_s0, 512, %s17_s10, [#allocation3]  }
   0xd   :  { %s103_s16 = scalar_lea.vmem %s27_s12, 512  ;;  %p108_p6 = scmp.lt.s32.totalorder %s27_s12, %s27_s12 }
   0xe   :  { %p104_p5 = scmp.ne.s32.totalorder %s27_s12, %s103_s16  ;;  %p109_p7 = scmp.lt.s32.totalorder %s103_s16, %s103_s16 }
  0x10   :  { %p110_p8 = por %p109_p7, %p108_p6 }
  0x12   :  { %p111_p9 = pnand %p110_p8, %p104_p5 }
  0x14   :  { %114 = shalt.err (!%p111_p9)
}
  0x15   :  { %29 = dma.hbm_to_vmem [thread:$0]  %s169_s1, 512, %s27_s12, [#allocation6]  }
  0x16   :  { %135 = dma.done.wait [#allocation3], 512  }
  0x17   :  { %136 = vsyncadd [#allocation3], 4294966784 }
  0x18   :  { %137 = dma.done.wait [#allocation6], 512  }
  0x19   :  { %138 = vsyncadd [#allocation6], 4294966784  ;;  %v36_v0 = vld [vmem:[#allocation2] sm:$0xff]  ;;  %v37_v2 = vld [vmem:[#allocation2 + $0x8] sm:$0xff]  ;;  %s143_s0 = smov [#allocation7]  }
  0x1a   :  { %v40_v1 = vld [vmem:[#allocation5] sm:$0xff]  ;;  %v41_v4 = vld [vmem:[#allocation5 + $0x8] sm:$0xff]  ;;  %v38_v5 = vld [vmem:[#allocation2 + $0x10] sm:$0xff]  ;;  %s62_s19 = sshll.u32 %s143_s0, 4  ;;  %s63_s19 = int_to_ptr.vmem [resolvable:$true] %s62_s19 }
  0x1b   :  { %v44_v3 = vsub.f32 %v36_v0, %v40_v1  ;;  %v42_v6 = vld [vmem:[#allocation5 + $0x10] sm:$0xff]  ;;  %v45_v7 = vsub.f32 %v37_v2, %v41_v4  ;;  %v39_v9 = vld [vmem:[#allocation2 + $0x18] sm:$0xff]  ;;  %s115_s1 = scalar_lea.vmem %s63_s19, 512  ;;  %p120_p11 = scmp.lt.s32.totalorder %s63_s19, %s63_s19 }
  0x1c   :  { %v46_v8 = vsub.f32 %v38_v5, %v42_v6  ;;  %v43_v10 = vld [vmem:[#allocation5 + $0x18] sm:$0xff]  ;;  %p116_p10 = scmp.ne.s32.totalorder %s63_s19, %s115_s1  ;;  %p121_p12 = scmp.lt.s32.totalorder %s115_s1, %s115_s1 }
  0x1d   :  { %v48_v11 = vand.u32 2147483647, %v44_v3  ;;  %v47_v12 = vsub.f32 %v39_v9, %v43_v10  ;;  %v49_v13 = vand.u32 2147483647, %v45_v7 }
  0x1e   :  { %v50_v14 = vand.u32 2147483647, %v46_v8  ;;  %p122_p13 = por %p121_p12, %p120_p11 }
  0x1f   :  { %52 = vst [vmem:[#allocation7] sm:$0xff] %v48_v11  ;;  %v51_v15 = vand.u32 2147483647, %v47_v12  ;;  %53 = vst [vmem:[#allocation7 + $0x8] sm:$0xff] %v49_v13 }
  0x20   :  { %54 = vst [vmem:[#allocation7 + $0x10] sm:$0xff] %v50_v14  ;;  %p123_p0 = pnand %p122_p13, %p116_p10 }
  0x21   :  { %55 = vst [vmem:[#allocation7 + $0x18] sm:$0xff] %v51_v15 }
  0x22   :  { %126 = shalt.err (!%p123_p0)
}
  0x23   :  { %65 = dma.vmem_to_hbm [thread:$0]  %s63_s19, 512, %s170_s2, [#allocation4]  }
  0x24   :  { %139 = dma.done.wait [#allocation4], 512  }
  0x25   :  { %140 = vsyncadd [#allocation4], 4294966784 }
  0x26   :  { %69 = vsyncpa [#allocation3], 1 }
  0x27   :  { %70 = vsyncpa [#allocation6], 1 }
  0x28   :  { %71 = vsyncpa [#allocation4], 1 }

</bundles_post_ra>
